<compile_context>
chip_gen: v7x
topology: tpu7x:2x2x1
jax: 0.10.0
libtpu: 0.0.40
codegen_flags: <defaults>
</compile_context>

<pallas_src>
import functools

import jax
import jax.numpy as jnp
from jax.experimental import pallas as pl
from jax.experimental.pallas import tpu as pltpu


# ----------------------------------------------------------------------------
# Fused kernel: im2col matmul + bias + BatchNorm(batch stats) + LeakyReLU(0.2)
# ----------------------------------------------------------------------------
def fused_conv_bn_lrelu_kernel(p_ref, w_ref, b_ref, g_ref, bt_ref, o_ref, *,
                               eps, slope, inv_n, mxu_bf16):
    # p_ref : (K*K*Cin, N)   im2col patches, N = B*Hout*Wout (lane-dense)
    # w_ref : (ct, K*K*Cin)  weight tile in im2col layout
    # b_ref : (ct, 1)        conv bias
    # g_ref : (ct, 1)        BN gamma
    # bt_ref: (ct, 1)        BN beta
    # o_ref : (ct, N)        output tile (channel-major, lane-dense N)
    patches = p_ref[...]
    weights = w_ref[...]
    if mxu_bf16:
        patches = patches.astype(jnp.bfloat16)
        weights = weights.astype(jnp.bfloat16)

    # Single MXU contraction over K*K*Cin (all taps folded in).
    y = jnp.dot(weights, patches, preferred_element_type=jnp.float32)  # (ct, N)
    y = y + b_ref[...]

    # Training-mode BatchNorm2d, one-pass batch stats (biased variance).
    s1 = jnp.sum(y, axis=1, keepdims=True)
    s2 = jnp.sum(y * y, axis=1, keepdims=True)
    mu = s1 * inv_n
    var = s2 * inv_n - mu * mu
    y = (y - mu) * jax.lax.rsqrt(var + eps)
    y = y * g_ref[...] + bt_ref[...]

    # LeakyReLU(0.2): single VPU max instead of cmp+select.
    o_ref[...] = jnp.maximum(y, slope * y)


# ----------------------------------------------------------------------------
# Parameter pre-transform (done once, outside the hot path)
# ----------------------------------------------------------------------------
def prepare_params(w_oihw, bias, gamma, beta):
    """PyTorch Conv2d weight (Cout, Cin, K, K) -> im2col (Cout, K*K*Cin)."""
    Cout, Cin, K, _ = w_oihw.shape
    w_im2col = jnp.transpose(w_oihw, (0, 2, 3, 1)).reshape(Cout, K * K * Cin)
    return {
        "w": w_im2col.astype(jnp.float32),
        "b": bias.reshape(Cout, 1).astype(jnp.float32),
        "gamma": gamma.reshape(Cout, 1).astype(jnp.float32),
        "beta": beta.reshape(Cout, 1).astype(jnp.float32),
        "K": K, "Cin": Cin, "Cout": Cout,
    }


# ----------------------------------------------------------------------------
# conv_downsample forward: NCHW in -> NCHW out
# ----------------------------------------------------------------------------
def conv_downsample_forward(x_nchw, params, *, stride=2, pad=1, mxu_bf16=False):
    B, Cin, H, W = x_nchw.shape
    K, Cout = params["K"], params["Cout"]
    assert params["Cin"] == Cin
    Hout = (H + 2 * pad - K) // stride + 1
    Wout = (W + 2 * pad - K) // stride + 1
    N = B * Hout * Wout
    KKC = K * K * Cin

    # ---- im2col in the wrapper (cheap strided slices on a tiny array; the ----
    # ---- resulting (KKC, N) matrix is DMA'd to VMEM exactly once).        ----
    x_nhwc = jnp.transpose(x_nchw, (0, 2, 3, 1)).astype(jnp.float32)
    x_pad = jnp.pad(x_nhwc, ((0, 0), (pad, pad), (pad, pad), (0, 0)))
    cols = []
    for ky in range(K):
        for kx in range(K):
            p = x_pad[:, ky:ky + (Hout - 1) * stride + 1:stride,
                         kx:kx + (Wout - 1) * stride + 1:stride, :]   # (B,Ho,Wo,Cin)
            cols.append(p.reshape(N, Cin))
    patches_t = jnp.concatenate(cols, axis=1).T                        # (KKC, N)

    # ---- channel tiling: shard Cout across TensorCores when large (v7x) ----
    ct = 128 if (Cout % 128 == 0) else Cout
    grid = (Cout // ct,)

    kernel = functools.partial(fused_conv_bn_lrelu_kernel,
                               eps=1e-5, slope=0.2, inv_n=1.0 / N,
                               mxu_bf16=mxu_bf16)

    out_cn = pl.pallas_call(
        kernel,
        out_shape=jax.ShapeDtypeStruct((Cout, N), jnp.float32),
        grid_spec=pltpu.PrefetchScalarGridSpec(
            num_scalar_prefetch=0,
            grid=grid,
            in_specs=[
                pl.BlockSpec((KKC, N), lambda i: (0, 0)),    # patches (resident)
                pl.BlockSpec((ct, KKC), lambda i: (i, 0)),   # weight tile
                pl.BlockSpec((ct, 1), lambda i: (i, 0)),     # bias
                pl.BlockSpec((ct, 1), lambda i: (i, 0)),     # gamma
                pl.BlockSpec((ct, 1), lambda i: (i, 0)),     # beta
            ],
            out_specs=pl.BlockSpec((ct, N), lambda i: (i, 0)),
        ),
        compiler_params=pltpu.CompilerParams(
            dimension_semantics=("parallel",),
            vmem_limit_bytes=64 * 1024 * 1024,
        ),
    )(patches_t, params["w"], params["b"], params["gamma"], params["beta"])

    # (Cout, B*Hout*Wout) -> (B, Cout, Hout, Wout)  (NCHW, like the PyTorch module)
    return jnp.transpose(out_cn.reshape(Cout, B, Hout, Wout), (1, 0, 2, 3))


# ----------------------------------------------------------------------------
# Demo / self-check
# ----------------------------------------------------------------------------
if __name__ == "__main__":
    B, nin, nout, H, W = 2, 4, 8, 16, 16
    K = 4

    key = jax.random.PRNGKey(0)
    kx, kw, kb, kg, kbt = jax.random.split(key, 5)
    x = jax.random.normal(kx, (B, nin, H, W), jnp.float32)
    w = 0.1 * jax.random.normal(kw, (nout, nin, K, K), jnp.float32)   # OIHW
    b = 0.05 * jax.random.normal(kb, (nout,), jnp.float32)
    gamma = 1.0 + 0.1 * jax.random.normal(kg, (nout,), jnp.float32)
    beta = 0.1 * jax.random.normal(kbt, (nout,), jnp.float32)

    params = prepare_params(w, b, gamma, beta)

    fwd = jax.jit(lambda xx: conv_downsample_forward(xx, params))
    out = jax.block_until_ready(fwd(x))

    assert out.shape == (B, nout, H // 2, W // 2), out.shape
    assert bool(jnp.all(jnp.isfinite(out)))

    # Pure-JAX reference (training-mode BN with batch stats, biased variance).
    def reference(xx):
        y = jax.lax.conv_general_dilated(
            xx, w, window_strides=(2, 2), padding=((1, 1), (1, 1)),
            dimension_numbers=("NCHW", "OIHW", "NCHW"))
        y = y + b.reshape(1, -1, 1, 1)
        mu = jnp.mean(y, axis=(0, 2, 3), keepdims=True)
        var = jnp.mean(jnp.square(y - mu), axis=(0, 2, 3), keepdims=True)
        y = (y - mu) * jax.lax.rsqrt(var + 1e-5)
        y = y * gamma.reshape(1, -1, 1, 1) + beta.reshape(1, -1, 1, 1)
        return jnp.where(y >= 0, y, 0.2 * y)

    ref = jax.block_until_ready(reference(x))
    max_err = float(jnp.max(jnp.abs(out - ref)))
    assert bool(jnp.allclose(out, ref, rtol=1e-3, atol=1e-3)), max_err

    print("KERNEL_OK")
</pallas_src>

<mosaic_0001>
module attributes {stable_mosaic.version = 11 : i64} {
  func.func @fused_conv_bn_lrelu_kernel(%arg0: i32, %arg1: memref<64x128xf32, #tpu.memory_space<vmem>>, %arg2: memref<8x64xf32, #tpu.memory_space<vmem>>, %arg3: memref<8x1xf32, #tpu.memory_space<vmem>>, %arg4: memref<8x1xf32, #tpu.memory_space<vmem>>, %arg5: memref<8x1xf32, #tpu.memory_space<vmem>>, %arg6: memref<8x128xf32, #tpu.memory_space<vmem>>) attributes {dimension_semantics = [#tpu.dimension_semantics<parallel>], iteration_bounds = array<i64: 1>, scalar_prefetch = 0 : i64, scratch_operands = 0 : i64, tpu.core_type = #tpu.core_type<tc>, window_params = [{pipeline_mode = #tpu.pipeline_mode<synchronous>, transform_indices = @transform_0, window_bounds = array<i64: 64, 128>}, {transform_indices = @transform_1, window_bounds = array<i64: 8, 64>}, {transform_indices = @transform_2, window_bounds = array<i64: 8, 1>}, {transform_indices = @transform_3, window_bounds = array<i64: 8, 1>}, {transform_indices = @transform_4, window_bounds = array<i64: 8, 1>}, {transform_indices = @transform_5, window_bounds = array<i64: 8, 128>}]} {
    %c0 = arith.constant 0 : index
    %c0_0 = arith.constant 0 : index
    %0 = vector.load %arg1[%c0, %c0_0] : memref<64x128xf32, #tpu.memory_space<vmem>>, vector<64x128xf32>
    %c0_1 = arith.constant 0 : index
    %c0_2 = arith.constant 0 : index
    %1 = vector.load %arg2[%c0_1, %c0_2] : memref<8x64xf32, #tpu.memory_space<vmem>>, vector<8x64xf32>
    %cst = arith.constant dense<0.000000e+00> : vector<8x128xf32>
    %2 = tpu.matmul %1, %0, %cst {dimension_numbers = #tpu.dot_dimension_numbers<[1], [0], [0], [1], [0, 0, 1, 1], [], []>} : vector<8x64xf32>, vector<64x128xf32>, vector<8x128xf32> -> vector<8x128xf32>
    %c0_3 = arith.constant 0 : index
    %c0_4 = arith.constant 0 : index
    %3 = vector.load %arg3[%c0_3, %c0_4] : memref<8x1xf32, #tpu.memory_space<vmem>>, vector<8x1xf32>
    %4 = vector.broadcast %3 : vector<8x1xf32> to vector<8x128xf32>
    %5 = arith.addf %2, %4 : vector<8x128xf32>
    %cst_5 = arith.constant dense<0.000000e+00> : vector<8xf32>
    %6 = vector.multi_reduction <add>, %5, %cst_5 [1] : vector<8x128xf32> to vector<8xf32>
    %7 = vector.shape_cast %6 : vector<8xf32> to vector<8x1xf32>
    %8 = arith.mulf %5, %5 : vector<8x128xf32>
    %cst_6 = arith.constant dense<0.000000e+00> : vector<8xf32>
    %9 = vector.multi_reduction <add>, %8, %cst_6 [1] : vector<8x128xf32> to vector<8xf32>
    %10 = vector.shape_cast %9 : vector<8xf32> to vector<8x1xf32>
    %cst_7 = arith.constant 7.812500e-03 : f32
    %11 = vector.broadcast %cst_7 : f32 to vector<8x1xf32>
    %12 = arith.mulf %7, %11 : vector<8x1xf32>
    %cst_8 = arith.constant 7.812500e-03 : f32
    %13 = vector.broadcast %cst_8 : f32 to vector<8x1xf32>
    %14 = arith.mulf %10, %13 : vector<8x1xf32>
    %15 = arith.mulf %12, %12 : vector<8x1xf32>
    %16 = arith.subf %14, %15 : vector<8x1xf32>
    %17 = vector.broadcast %12 : vector<8x1xf32> to vector<8x128xf32>
    %18 = arith.subf %5, %17 : vector<8x128xf32>
    %cst_9 = arith.constant 9.99999974E-6 : f32
    %19 = vector.broadcast %cst_9 : f32 to vector<8x1xf32>
    %20 = arith.addf %16, %19 : vector<8x1xf32>
    %21 = math.rsqrt %20 : vector<8x1xf32>
    %22 = vector.broadcast %21 : vector<8x1xf32> to vector<8x128xf32>
    %23 = arith.mulf %18, %22 : vector<8x128xf32>
    %c0_10 = arith.constant 0 : index
    %c0_11 = arith.constant 0 : index
    %24 = vector.load %arg4[%c0_10, %c0_11] : memref<8x1xf32, #tpu.memory_space<vmem>>, vector<8x1xf32>
    %25 = vector.broadcast %24 : vector<8x1xf32> to vector<8x128xf32>
    %26 = arith.mulf %23, %25 : vector<8x128xf32>
    %c0_12 = arith.constant 0 : index
    %c0_13 = arith.constant 0 : index
    %27 = vector.load %arg5[%c0_12, %c0_13] : memref<8x1xf32, #tpu.memory_space<vmem>>, vector<8x1xf32>
    %28 = vector.broadcast %27 : vector<8x1xf32> to vector<8x128xf32>
    %29 = arith.addf %26, %28 : vector<8x128xf32>
    %cst_14 = arith.constant 2.000000e-01 : f32
    %30 = vector.broadcast %cst_14 : f32 to vector<8x128xf32>
    %31 = arith.mulf %30, %29 : vector<8x128xf32>
    %32 = arith.maximumf %29, %31 : vector<8x128xf32>
    %c0_15 = arith.constant 0 : index
    %c0_16 = arith.constant 0 : index
    %33 = vector.load %arg6[%c0_15, %c0_16] : memref<8x128xf32, #tpu.memory_space<vmem>>, vector<8x128xf32>
    tpu.vector_store %arg6[%c0_15, %c0_16], %32 {strides = array<i32>} : memref<8x128xf32, #tpu.memory_space<vmem>>, vector<8x128xf32>,
    return
  }
  func.func @transform_0(%arg0: i32) -> (i32, i32) {
    %c0_i32 = arith.constant 0 : i32
    %c0_i32_0 = arith.constant 0 : i32
    %c0_i32_1 = arith.constant 0 : i32
    return %c0_i32, %c0_i32_0 : i32, i32
  }
  func.func @transform_1(%arg0: i32) -> (i32, i32) {
    %c0_i32 = arith.constant 0 : i32
    %c0_i32_0 = arith.constant 0 : i32
    return %arg0, %c0_i32 : i32, i32
  }
  func.func @transform_2(%arg0: i32) -> (i32, i32) {
    %c0_i32 = arith.constant 0 : i32
    %c0_i32_0 = arith.constant 0 : i32
    return %arg0, %c0_i32 : i32, i32
  }
  func.func @transform_3(%arg0: i32) -> (i32, i32) {
    %c0_i32 = arith.constant 0 : i32
    %c0_i32_0 = arith.constant 0 : i32
    return %arg0, %c0_i32 : i32, i32
  }
  func.func @transform_4(%arg0: i32) -> (i32, i32) {
    %c0_i32 = arith.constant 0 : i32
    %c0_i32_0 = arith.constant 0 : i32
    return %arg0, %c0_i32 : i32, i32
  }
  func.func @transform_5(%arg0: i32) -> (i32, i32) {
    %c0_i32 = arith.constant 0 : i32
    %c0_i32_0 = arith.constant 0 : i32
    return %arg0, %c0_i32 : i32, i32
  }
}

</mosaic_0001>

<bundles_post_ra>
// kernel: _lambda_.1
= control target key start
LH: loop header
LB: loop body
LE: loop exit
PB: predicated region body
PF: predicated region fallthrough
CT: control target
= control target key end

     0   :  { %10 = vsyncpa [#allocation3], 0  ;;  %s528_s0 = inlined_call_operand.hbm [shape: f32[64,128], index: 0, kind: input, shape index: {}]   ;;  %s529_s1 = inlined_call_operand.hbm [shape: f32[8,64], index: 1, kind: input, shape index: {}]   ;;  %s530_s2 = inlined_call_operand.hbm [shape: f32[8,1], index: 2, kind: input, shape index: {}]   ;;  %s531_s3 = inlined_call_operand.hbm [shape: f32[8,1], index: 3, kind: input, shape index: {}]   ;;  %s532_s4 = inlined_call_operand.hbm [shape: f32[8,1], index: 4, kind: input, shape index: {}]   ;;  %s533_s5 = inlined_call_operand.hbm [shape: f32[8,128], index: 5, kind: output, shape index: {}]  }
   0x1   :  { %11 = vsyncpa [#allocation6], 0 }
   0x2   :  { %12 = vsyncpa [#allocation9], 0 }
   0x3   :  { %13 = vsyncpa [#allocation4], 0  ;;  %s414_s18 = smov [#allocation5]   ;;  %s415_s20 = smov [#allocation8]  }
   0x4   :  { %s32_s19 = sshll.u32 %s414_s18, 4  ;;  %s52_s21 = sshll.u32 %s415_s20, 4  ;;  %s33_s19 = int_to_ptr.vmem [resolvable:$true] %s32_s19  ;;  %s53_s21 = int_to_ptr.vmem [resolvable:$true] %s52_s21 }
   0x5   :  { %s274_s24 = scalar_lea.hbm %s529_s1, 128 }
   0x6   :  { %p275_p0 = scmp.ne.s32.totalorder %s529_s1, %s274_s24  ;;  %p278_p1 = scmp.lt.u32.totalorder %s274_s24, %s529_s1 }
   0x8   :  { %p280_p2 = pnand %p278_p1, %p275_p0 }
   0xa   :  { %283 = shalt.err (!%p280_p2)
}
   0xb   :  { %s284_s29 = scalar_lea.vmem %s33_s19, 128  ;;  %p289_p4 = scmp.lt.s32.totalorder %s33_s19, %s33_s19 }
   0xc   :  { %p285_p3 = scmp.ne.s32.totalorder %s33_s19, %s284_s29  ;;  %p290_p5 = scmp.lt.s32.totalorder %s284_s29, %s284_s29 }
   0xe   :  { %p291_p6 = por %p290_p5, %p289_p4 }
  0x10   :  { %p292_p7 = pnand %p291_p6, %p285_p3 }
  0x12   :  { %295 = shalt.err (!%p292_p7)
}
  0x13   :  { %35 = dma.hbm_to_vmem [thread:$0]  %s529_s1, 128, %s33_s19, [#allocation6]  }
  0x14   :  { %s296_s9 = scalar_lea.hbm %s531_s3, 128 }
  0x15   :  { %p297_p8 = scmp.ne.s32.totalorder %s531_s3, %s296_s9  ;;  %p300_p9 = scmp.lt.u32.totalorder %s296_s9, %s531_s3 }
  0x17   :  { %p302_p10 = pnand %p300_p9, %p297_p8 }
  0x19   :  { %305 = shalt.err (!%p302_p10)
}
  0x1a   :  { %s306_s14 = scalar_lea.vmem %s53_s21, 128  ;;  %p311_p12 = scmp.lt.s32.totalorder %s53_s21, %s53_s21 }
  0x1b   :  { %p307_p11 = scmp.ne.s32.totalorder %s53_s21, %s306_s14  ;;  %p312_p13 = scmp.lt.s32.totalorder %s306_s14, %s306_s14 }
  0x1d   :  { %p313_p0 = por %p312_p13, %p311_p12 }
  0x1f   :  { %p314_p1 = pnand %p313_p0, %p307_p11 }
  0x21   :  { %317 = shalt.err (!%p314_p1)
}
  0x22   :  { %55 = dma.hbm_to_vmem [thread:$0]  %s531_s3, 128, %s53_s21, [#allocation9]  }
  0x23   :  { %s416_s16 = smov [#allocation2]   ;;  %s318_s20 = scalar_lea.hbm %s528_s0, 1024 }
  0x24   :  { %s19_s17 = sshll.u32 %s416_s16, 4  ;;  %p319_p2 = scmp.ne.s32.totalorder %s528_s0, %s318_s20  ;;  %s20_s17 = int_to_ptr.vmem [resolvable:$true] %s19_s17 }
  0x25   :  { %p322_p3 = scmp.lt.u32.totalorder %s318_s20, %s528_s0 }
  0x27   :  { %p324_p4 = pnand %p322_p3, %p319_p2 }
  0x29   :  { %327 = shalt.err (!%p324_p4)
}
  0x2a   :  { %s328_s26 = scalar_lea.vmem %s20_s17, 1024  ;;  %p333_p6 = scmp.lt.s32.totalorder %s20_s17, %s20_s17 }
  0x2b   :  { %p329_p5 = scmp.ne.s32.totalorder %s20_s17, %s328_s26  ;;  %p334_p7 = scmp.lt.s32.totalorder %s328_s26, %s328_s26 }
  0x2d   :  { %p335_p8 = por %p334_p7, %p333_p6 }
  0x2f   :  { %p336_p9 = pnand %p335_p8, %p329_p5 }
  0x31   :  { %339 = shalt.err (!%p336_p9)
}
  0x32   :  { %s417_s3 = smov 128   ;;  %s418_s21 = smov 8  }
  0x33   :  { %25 = dma.hbm_to_vmem [thread:$0]  %s528_s0, 1024, %s20_s17, [#allocation3], %s417_s3, %s417_s3, %s418_s21  }
  0x34   :  { %s419_s29 = smov [#allocation7]   ;;  %s420_s6 = smov [#allocation10]  }
  0x35   :  { %s42_s30 = sshll.u32 %s419_s29, 4  ;;  %s62_s7 = sshll.u32 %s420_s6, 4  ;;  %s43_s30 = int_to_ptr.vmem [resolvable:$true] %s42_s30  ;;  %s63_s7 = int_to_ptr.vmem [resolvable:$true] %s62_s7 }
  0x36   :  { %s340_s10 = scalar_lea.hbm %s530_s2, 128 }
  0x37   :  { %p341_p10 = scmp.ne.s32.totalorder %s530_s2, %s340_s10  ;;  %p344_p11 = scmp.lt.u32.totalorder %s340_s10, %s530_s2 }
  0x39   :  { %p346_p12 = pnand %p344_p11, %p341_p10 }
  0x3b   :  { %349 = shalt.err (!%p346_p12)
}
  0x3c   :  { %s350_s0 = scalar_lea.vmem %s43_s30, 128  ;;  %p355_p0 = scmp.lt.s32.totalorder %s43_s30, %s43_s30 }
  0x3d   :  { %p351_p13 = scmp.ne.s32.totalorder %s43_s30, %s350_s0  ;;  %p356_p1 = scmp.lt.s32.totalorder %s350_s0, %s350_s0 }
  0x3f   :  { %p357_p2 = por %p356_p1, %p355_p0 }
  0x41   :  { %p358_p3 = pnand %p357_p2, %p351_p13 }
  0x43   :  { %361 = shalt.err (!%p358_p3)
}
  0x44   :  { %45 = dma.hbm_to_vmem [thread:$0]  %s530_s2, 128, %s43_s30, [#allocation6]  }
  0x45   :  { %s362_s18 = scalar_lea.hbm %s532_s4, 128 }
  0x46   :  { %p363_p4 = scmp.ne.s32.totalorder %s532_s4, %s362_s18  ;;  %p366_p5 = scmp.lt.u32.totalorder %s362_s18, %s532_s4 }
  0x48   :  { %p368_p6 = pnand %p366_p5, %p363_p4 }
  0x4a   :  { %371 = shalt.err (!%p368_p6)
}
  0x4b   :  { %s372_s24 = scalar_lea.vmem %s63_s7, 128  ;;  %p377_p8 = scmp.lt.s32.totalorder %s63_s7, %s63_s7 }
  0x4c   :  { %p373_p7 = scmp.ne.s32.totalorder %s63_s7, %s372_s24  ;;  %p378_p9 = scmp.lt.s32.totalorder %s372_s24, %s372_s24 }
  0x4e   :  { %p379_p10 = por %p378_p9, %p377_p8 }
  0x50   :  { %p380_p11 = pnand %p379_p10, %p373_p7 }
  0x52   :  { %383 = shalt.err (!%p380_p11)
}
  0x53   :  { %65 = dma.hbm_to_vmem [thread:$0]  %s532_s4, 128, %s63_s7, [#allocation9]  }
  0x54   :  { %406 = dma.done.wait [#allocation3], 1024  }
  0x55   :  { %407 = vsyncadd [#allocation3], 4294966272 }
  0x56   :  { %408 = dma.done.wait [#allocation6], 256  }
  0x57   :  { %409 = vsyncadd [#allocation6], 4294967040 }
  0x58   :  { %410 = dma.done.wait [#allocation9], 256  }
  0x59   :  { %411 = vsyncadd [#allocation9], 4294967040  ;;  %v421_v0 = vmov 0.0|0.0   ;;  %vm422_vm0 = vmmov 0   ;;  %v423_v1 = vmov 0.0   ;;  %v424_v2 = vmov 0  }
  0x5a   :  { %246 = vmatprep.subr.bf16.mxu0 %v421_v0  ;;  %243 = vmatprep.mubr.msk.f32.mxu0 %vm422_vm0, %v423_v1  ;;  %v81_v3 = vld [vmem:[#allocation2] sm:$0xff]  ;;  %v82_v4 = vld [vmem:[#allocation2 + $0x8] sm:$0xff]  ;;  %v83_v5 = vld [vmem:[#allocation2 + $0x10] sm:$0xff]  ;;  %vm96_vm1 = vcmask 523264   ;;  %s425_s4 = smov [#allocation11]  }
  0x5b   :  { %270 = vset.pattern.permute.xlu0 %v424_v2  ;;  %271 = vset.pattern.permute.xlu1 %v424_v2  ;;  %v247_v6 = vpack.c.bf16 %v82_v4, %v81_v3  ;;  %v84_v7 = vld [vmem:[#allocation2 + $0x18] sm:$0xff]  ;;  %v90_v9 = vld [vmem:[#allocation7] sm:$0xff]  ;;  %v183_v10 = vld [vmem:[#allocation8] sm:$0xff]  ;;  %s206_s26 = sshll.u32 %s425_s4, 4  ;;  %s207_s26 = int_to_ptr.vmem [resolvable:$true] %s206_s26 }
  0x5c   :  { %v250_v8 = vpack.c.bf16 %v84_v7, %v83_v5  ;;  %v85_v11 = vld [vmem:[#allocation2 + $0x20] sm:$0xff]  ;;  %v86_v12 = vld [vmem:[#allocation2 + $0x28] sm:$0xff]  ;;  %93 = vperm.xlu0 %270, %v90_v9   ;;  %186 = vperm.xlu1 %271, %v183_v10   ;;  %v87_v14 = vld [vmem:[#allocation2 + $0x30] sm:$0xff]  ;;  %s384_s3 = scalar_lea.vmem %s207_s26, 128  ;;  %p389_p13 = scmp.lt.s32.totalorder %s207_s26, %s207_s26 }
  0x5d   :  { %248 = vmatpush3.bf16.msra.mxu0 %v247_v6  ;;  %v253_v13 = vpack.c.bf16 %v86_v12, %v85_v11  ;;  %v88_v15 = vld [vmem:[#allocation2 + $0x38] sm:$0xff]  ;;  %v89_v17 = vld [vmem:[#allocation5] sm:$0xff]  ;;  %p385_p12 = scmp.ne.s32.totalorder %s207_s26, %s384_s3  ;;  %p390_p0 = scmp.lt.s32.totalorder %s384_s3, %s384_s3 }
  0x5e   :  { %249 = vmatprep.subr.bf16.mxu0 %v421_v0  ;;  %v256_v16 = vpack.c.bf16 %v88_v15, %v87_v14  ;;  %v190_v23 = vld [vmem:[#allocation10] sm:$0xff] }
  0x5f   :  { %p391_p1 = por %p390_p0, %p389_p13 }
  0x61   :  { %251 = vmatpush3.bf16.msra.mxu0 %v250_v8  ;;  %p392_p2 = pnand %p391_p1, %p385_p12 }
  0x62   :  { %252 = vmatprep.subr.bf16.mxu0 %v421_v0 }
  0x65   :  { %254 = vmatpush3.bf16.msra.mxu0 %v253_v13 }
  0x66   :  { %255 = vmatprep.subr.bf16.mxu0 %v421_v0 }
  0x69   :  { %257 = vmatpush3.bf16.msra.mxu0 %v256_v16 }
  0x6c   :  { %244 = vmatmul.mubr.msk.f32.vlgmr.msra.gmra.mrb[0].mxu0 %vm96_vm1, %v89_v17 }
  0xdb   :  { %v94_v18 = vpop.permute.xlu0 %93  ;;  %v187_v24 = vpop.permute.xlu1 %186 }
 0x13f   :  { %v166_v19 = vpop.f32.mrb[0].mxu0 }
 0x140   :  { %v167_v20 = vadd.f32 %v166_v19, %v94_v18  ;;  %v245_v21 = vpop.f32.mrb[1].mxu0 }
 0x142   :  { %170 = vadd.xlane.f32.xlu0 %v167_v20  ;;  %v172_v22 = vmul.f32 %v167_v20, %v167_v20 }
 0x144   :  { %173 = vadd.xlane.f32.xlu1 %v172_v22 }
 0x155   :  { %193 = vperm.xlu1 %271, %v190_v23  }
 0x1cf   :  { %v171_v25 = vpop.xlane.xlu0 %170 }
 0x1d0   :  { %v175_v26 = vmul.f32 0.0078125, %v171_v25 }
 0x1d1   :  { %v174_v27 = vpop.xlane.xlu1 %173 }
 0x1d2   :  { %v177_v28 = vmul.f32 %v175_v26, %v175_v26  ;;  %v176_v29 = vmul.f32 0.0078125, %v174_v27  ;;  %v179_v32 = vsub.f32 %v167_v20, %v175_v26 }
 0x1d4   :  { %v178_v30 = vsub.f32 %v176_v29, %v177_v28 }
 0x1d5   :  { %v194_v36 = vpop.permute.xlu1 %193 }
 0x1d6   :  { %v180_v31 = vadd.f32 1e-05, %v178_v30 }
 0x1d8   :  { %272 = vrsqrt.f32 %v180_v31 }
 0x1e2   :  { %v273_v33 = vpop.eup %272 }
 0x1e3   :  { %v182_v34 = vmul.f32 %v273_v33, %v179_v32 }
 0x1e5   :  { %v189_v35 = vmul.f32 %v187_v24, %v182_v34 }
 0x1e7   :  { %v196_v37 = vadd.f32 %v194_v36, %v189_v35 }
 0x1e9   :  { %v197_v38 = vmul.f32 0.2, %v196_v37 }
 0x1eb   :  { %v198_v39 = vmax.f32 %v196_v37, %v197_v38 }
 0x1ed   :  { %199 = vst [vmem:[#allocation11] sm:$0xff] %v198_v39 }
 0x1ee   :  { %395 = shalt.err (!%p392_p2)
}
 0x1ef   :  { %s396_s28 = scalar_lea.hbm %s533_s5, 128 }
 0x1f0   :  { %p397_p3 = scmp.ne.s32.totalorder %s533_s5, %s396_s28  ;;  %p400_p4 = scmp.lt.u32.totalorder %s396_s28, %s533_s5 }
 0x1f2   :  { %p402_p5 = pnand %p400_p4, %p397_p3 }
 0x1f4   :  { %405 = shalt.err (!%p402_p5)
}
 0x1f5   :  { %209 = dma.vmem_to_hbm [thread:$0]  %s207_s26, 128, %s533_s5, [#allocation4]  }
 0x1f6   :  { %412 = dma.done.wait [#allocation4], 128  }
 0x1f7   :  { %413 = vsyncadd [#allocation4], 4294967168 }
 0x1f8   :  { %213 = vsyncpa [#allocation3], 1 }
 0x1f9   :  { %214 = vsyncpa [#allocation6], 1 }
 0x1fa   :  { %215 = vsyncpa [#allocation9], 1 }
 0x1fb   :  { %216 = vsyncpa [#allocation4], 1 }

</bundles_post_ra>
